<compile_context>
chip_gen: v6e
topology: v6e:2x2x1
jax: 0.10.0
libtpu: 0.0.40
codegen_flags: <defaults>
</compile_context>

<pallas_src>
import functools

import jax
import jax.numpy as jnp
from jax.experimental import pallas as pl
from jax.experimental.pallas import tpu as pltpu

GIN_EPS = 0.0   # GINConv default eps (train_eps=False)
BN_EPS = 1e-5   # BatchNorm1d default eps


# --------------------------------------------------------------------------
# Kernel A: per-row-tile  agg -> pre -> Linear  + partial BN statistics
# --------------------------------------------------------------------------
def gin_lin_kernel(adj_ref, x_ref, w_ref, lin_ref, stats_ref, *, tm):
    i = pl.program_id(0)
    row0 = pl.multiple_of(i * tm, tm)

    adj = adj_ref[...]                                    # (TM, N)  bf16
    x_full = x_ref[...]                                   # (N,  F)  bf16

    # GIN sum aggregation on the MXU (bf16 inputs, f32 accumulation).
    agg = jnp.dot(adj, x_full, preferred_element_type=jnp.float32)    # (TM, F) f32

    # Self term for this row tile.
    x_tile = x_ref[pl.ds(row0, tm), :].astype(jnp.float32)            # (TM, F) f32
    pre = (1.0 + GIN_EPS) * x_tile + agg                              # (TM, F) f32

    # Linear(F, Hp): bf16 MXU operands, f32 accumulation.  Bias omitted — it is
    # exactly cancelled by the training-mode BatchNorm mean subtraction.
    lin = jnp.dot(pre.astype(jnp.bfloat16), w_ref[...],
                  preferred_element_type=jnp.float32)                 # (TM, Hp) f32
    lin_ref[...] = lin

    # Per-tile partial BN statistics (sum and sum of squares over node rows).
    s = jnp.sum(lin, axis=0, keepdims=True)                           # (1, Hp)
    sq = jnp.sum(lin * lin, axis=0, keepdims=True)                    # (1, Hp)
    stats_ref[...] = jnp.concatenate([s, sq], axis=0).reshape(1, 2, -1)


# --------------------------------------------------------------------------
# Kernel B: apply BatchNorm with fused scale/shift (single-pass variance)
# --------------------------------------------------------------------------
def bn_apply_kernel(stats_ref, gamma_ref, beta_ref, lin_ref, out_ref, *, inv_n):
    stats = stats_ref[...]                                # (2, Hp) f32
    mean = stats[0:1, :] * inv_n                          # (1, Hp)
    var = stats[1:2, :] * inv_n - mean * mean             # (1, Hp)
    scale = gamma_ref[...] * jax.lax.rsqrt(var + BN_EPS)  # gamma folded into inv_std
    shift = beta_ref[...] - mean * scale
    out_ref[...] = lin_ref[...] * scale + shift


# --------------------------------------------------------------------------
# Wrapper
# --------------------------------------------------------------------------
def _pick_row_tile(n):
    for tm in (512, 256, 128):
        if n > tm and n % tm == 0:
            return tm
    return n


@jax.jit
def gin_encoder_forward(adj, x, w, b, gamma, beta):
    # `b` is accepted for API parity with the PyTorch module, but it is a
    # mathematical no-op under training-mode BatchNorm and is not used.
    del b
    n, f = x.shape
    h = w.shape[1]
    hp = max(128, ((h + 127) // 128) * 128)               # lane-dense output width
    tm = _pick_row_tile(n)
    num_tiles = n // tm
    inv_n = 1.0 / n

    # Pad Linear / BN params to the lane-dense width; cast MXU operands to bf16.
    w_p = jnp.zeros((f, hp), jnp.float32).at[:, :h].set(w).astype(jnp.bfloat16)
    gamma_p = jnp.ones((1, hp), jnp.float32).at[:, :h].set(gamma)
    beta_p = jnp.zeros((1, hp), jnp.float32).at[:, :h].set(beta)
    adj_b = adj.astype(jnp.bfloat16)                      # counts: exact in bf16
    x_b = x.astype(jnp.bfloat16)

    cparams = pltpu.CompilerParams(
        dimension_semantics=("parallel",),
        vmem_limit_bytes=32 * 1024 * 1024,
    )

    # ---- Kernel A: aggregation + Linear + partial BN stats -----------------
    cost_a = pl.CostEstimate(
        flops=2 * n * n * f + 2 * n * f * hp,
        transcendentals=0,
        bytes_accessed=2 * n * n + 2 * n * f + 2 * f * hp
        + 4 * n * hp + 4 * num_tiles * 2 * hp,
    )
    lin, stats_partial = pl.pallas_call(
        functools.partial(gin_lin_kernel, tm=tm),
        out_shape=(
            jax.ShapeDtypeStruct((n, hp), jnp.float32),
            jax.ShapeDtypeStruct((num_tiles, 2, hp), jnp.float32),
        ),
        grid=(num_tiles,),
        in_specs=[
            pl.BlockSpec((tm, n), lambda i: (i, 0)),      # adj row tile (streamed)
            pl.BlockSpec((n, f), lambda i: (0, 0)),       # x resident
            pl.BlockSpec((f, hp), lambda i: (0, 0)),      # W resident
        ],
        out_specs=(
            pl.BlockSpec((tm, hp), lambda i: (i, 0)),
            pl.BlockSpec((1, 2, hp), lambda i: (i, 0, 0)),
        ),
        compiler_params=cparams,
        cost_estimate=cost_a,
    )(adj_b, x_b, w_p)

    # Tiny host-side reduce of the per-tile partial statistics.
    stats_tot = jnp.sum(stats_partial, axis=0)            # (2, Hp)

    # ---- Kernel B: apply BatchNorm -----------------------------------------
    cost_b = pl.CostEstimate(
        flops=2 * n * hp,
        transcendentals=hp,
        bytes_accessed=8 * n * hp + 4 * (2 + 1 + 1) * hp,
    )
    out_p = pl.pallas_call(
        functools.partial(bn_apply_kernel, inv_n=inv_n),
        out_shape=jax.ShapeDtypeStruct((n, hp), jnp.float32),
        grid=(num_tiles,),
        in_specs=[
            pl.BlockSpec((2, hp), lambda i: (0, 0)),      # global stats
            pl.BlockSpec((1, hp), lambda i: (0, 0)),      # gamma
            pl.BlockSpec((1, hp), lambda i: (0, 0)),      # beta
            pl.BlockSpec((tm, hp), lambda i: (i, 0)),     # lin tile
        ],
        out_specs=pl.BlockSpec((tm, hp), lambda i: (i, 0)),
        compiler_params=cparams,
        cost_estimate=cost_b,
    )(stats_tot, gamma_p, beta_p, lin)

    return out_p[:, :h]


# --------------------------------------------------------------------------
# Pure-JAX f32 reference (mirrors the PyTorch module, including the bias)
# --------------------------------------------------------------------------
def reference_forward(adj, x, w, b, gamma, beta):
    agg = adj @ x
    pre = (1.0 + GIN_EPS) * x + agg
    lin = pre @ w + b
    mean = lin.mean(axis=0, keepdims=True)
    var = ((lin - mean) ** 2).mean(axis=0, keepdims=True)
    return (lin - mean) / jnp.sqrt(var + BN_EPS) * gamma + beta


if __name__ == "__main__":
    # Small deterministic synthetic graph + parameters.
    N = 128          # number of nodes
    F = 16           # args.num_features
    H = 32           # args.hidden
    E = 512          # number of directed edges

    key = jax.random.PRNGKey(0)
    k_x, k_src, k_dst, k_w, k_b, k_g, k_beta = jax.random.split(key, 7)

    x = jax.random.normal(k_x, (N, F), dtype=jnp.float32)

    # edge_index [2, E]: messages flow src -> dst, aggregated at dst.
    src = jax.random.randint(k_src, (E,), 0, N)
    dst = jax.random.randint(k_dst, (E,), 0, N)
    # TODO(synk): sparse scatter-add aggregation (edge_index gather/segment-sum)
    # is densified here into an adjacency matmul; a CSR + scalar-prefetch kernel
    # would avoid the O(N^2) adjacency for large graphs.
    adj = jnp.zeros((N, N), dtype=jnp.float32).at[dst, src].add(1.0)

    # Linear(F, H) parameters (PyTorch stores weight [H, F]; we use W = weight^T).
    w = jax.random.normal(k_w, (F, H), dtype=jnp.float32) * (1.0 / jnp.sqrt(F))
    b = jax.random.normal(k_b, (1, H), dtype=jnp.float32) * 0.1
    # BatchNorm1d affine params.
    gamma = 1.0 + 0.1 * jax.random.normal(k_g, (1, H), dtype=jnp.float32)
    beta = 0.1 * jax.random.normal(k_beta, (1, H), dtype=jnp.float32)

    out = gin_encoder_forward(adj, x, w, b, gamma, beta)
    out = jax.block_until_ready(out)

    ref = reference_forward(adj, x, w, b, gamma, beta)
    assert out.shape == (N, H)
    # bf16 MXU operands vs f32 reference: allow ~bf16-level relative error.
    assert jnp.allclose(out, ref, atol=5e-2, rtol=5e-2), "mismatch vs reference"

    print("KERNEL_OK")
</pallas_src>

<mosaic_0001>
module attributes {stable_mosaic.version = 11 : i64} {
  func.func @gin_lin_kernel(%arg0: i32, %arg1: memref<128x128xbf16, #tpu.memory_space<vmem>>, %arg2: memref<128x16xbf16, #tpu.memory_space<vmem>>, %arg3: memref<16x128xbf16, #tpu.memory_space<vmem>>, %arg4: memref<128x128xf32, #tpu.memory_space<vmem>>, %arg5: memref<1x2x128xf32, #tpu.memory_space<vmem>>) attributes {dimension_semantics = [#tpu.dimension_semantics<parallel>], iteration_bounds = array<i64: 1>, scalar_prefetch = 0 : i64, scratch_operands = 0 : i64, tpu.core_type = #tpu.core_type<tc>, window_params = [{transform_indices = @transform_0, window_bounds = array<i64: 128, 128>}, {pipeline_mode = #tpu.pipeline_mode<synchronous>, transform_indices = @transform_1, window_bounds = array<i64: 128, 16>}, {pipeline_mode = #tpu.pipeline_mode<synchronous>, transform_indices = @transform_2, window_bounds = array<i64: 16, 128>}, {transform_indices = @transform_3, window_bounds = array<i64: 128, 128>}, {transform_indices = @transform_4, window_bounds = array<i64: 1, 2, 128>}]} {
    %c128_i32 = arith.constant 128 : i32
    %0 = arith.muli %arg0, %c128_i32 : i32
    %1 = tpu.assume_multiple %0, 128 : i32
    %c0 = arith.constant 0 : index
    %c0_0 = arith.constant 0 : index
    %2 = vector.load %arg1[%c0, %c0_0] : memref<128x128xbf16, #tpu.memory_space<vmem>>, vector<128x128xbf16>
    %c0_1 = arith.constant 0 : index
    %c0_2 = arith.constant 0 : index
    %3 = vector.load %arg2[%c0_1, %c0_2] : memref<128x16xbf16, #tpu.memory_space<vmem>>, vector<128x16xbf16>
    %cst = arith.constant dense<0.000000e+00> : vector<128x16xf32>
    %4 = tpu.matmul %2, %3, %cst {dimension_numbers = #tpu.dot_dimension_numbers<[1], [0], [0], [1], [0, 0, 1, 1], [], []>} : vector<128x128xbf16>, vector<128x16xbf16>, vector<128x16xf32> -> vector<128x16xf32>
    %5 = arith.index_cast %1 : i32 to index
    %c0_3 = arith.constant 0 : index
    %6 = vector.load %arg2[%5, %c0_3] : memref<128x16xbf16, #tpu.memory_space<vmem>>, vector<128x16xbf16>
    %7 = arith.extf %6 : vector<128x16xbf16> to vector<128x16xf32>
    %cst_4 = arith.constant 1.000000e+00 : f32
    %8 = vector.broadcast %cst_4 : f32 to vector<128x16xf32>
    %9 = arith.mulf %8, %7 : vector<128x16xf32>
    %10 = arith.addf %9, %4 : vector<128x16xf32>
    %11 = arith.truncf %10 : vector<128x16xf32> to vector<128x16xbf16>
    %c0_5 = arith.constant 0 : index
    %c0_6 = arith.constant 0 : index
    %12 = vector.load %arg3[%c0_5, %c0_6] : memref<16x128xbf16, #tpu.memory_space<vmem>>, vector<16x128xbf16>
    %cst_7 = arith.constant dense<0.000000e+00> : vector<128x128xf32>
    %13 = tpu.matmul %11, %12, %cst_7 {dimension_numbers = #tpu.dot_dimension_numbers<[1], [0], [0], [1], [0, 0, 1, 1], [], []>} : vector<128x16xbf16>, vector<16x128xbf16>, vector<128x128xf32> -> vector<128x128xf32>
    %c0_8 = arith.constant 0 : index
    %c0_9 = arith.constant 0 : index
    %14 = vector.load %arg4[%c0_8, %c0_9] : memref<128x128xf32, #tpu.memory_space<vmem>>, vector<128x128xf32>
    tpu.vector_store %arg4[%c0_8, %c0_9], %13 {strides = array<i32>} : memref<128x128xf32, #tpu.memory_space<vmem>>, vector<128x128xf32>,
    %cst_10 = arith.constant dense<0.000000e+00> : vector<128xf32>
    %15 = vector.multi_reduction <add>, %13, %cst_10 [0] : vector<128x128xf32> to vector<128xf32>
    %16 = vector.shape_cast %15 : vector<128xf32> to vector<1x128xf32>
    %17 = arith.mulf %13, %13 : vector<128x128xf32>
    %cst_11 = arith.constant dense<0.000000e+00> : vector<128xf32>
    %18 = vector.multi_reduction <add>, %17, %cst_11 [0] : vector<128x128xf32> to vector<128xf32>
    %19 = vector.shape_cast %18 : vector<128xf32> to vector<1x128xf32>
    %20 = tpu.concatenate %16, %19 in 0 : vector<1x128xf32>, vector<1x128xf32> -> vector<2x128xf32>
    %21 = vector.shape_cast %20 : vector<2x128xf32> to vector<1x2x128xf32>
    %c0_12 = arith.constant 0 : index
    %c0_13 = arith.constant 0 : index
    %c0_14 = arith.constant 0 : index
    %22 = vector.load %arg5[%c0_12, %c0_13, %c0_14] : memref<1x2x128xf32, #tpu.memory_space<vmem>>, vector<1x2x128xf32>
    tpu.vector_store %arg5[%c0_12, %c0_13, %c0_14], %21 {strides = array<i32>} : memref<1x2x128xf32, #tpu.memory_space<vmem>>, vector<1x2x128xf32>,
    return
  }
  func.func @transform_0(%arg0: i32) -> (i32, i32) {
    %c0_i32 = arith.constant 0 : i32
    %c0_i32_0 = arith.constant 0 : i32
    return %arg0, %c0_i32 : i32, i32
  }
  func.func @transform_1(%arg0: i32) -> (i32, i32) {
    %c0_i32 = arith.constant 0 : i32
    %c0_i32_0 = arith.constant 0 : i32
    %c0_i32_1 = arith.constant 0 : i32
    return %c0_i32, %c0_i32_0 : i32, i32
  }
  func.func @transform_2(%arg0: i32) -> (i32, i32) {
    %c0_i32 = arith.constant 0 : i32
    %c0_i32_0 = arith.constant 0 : i32
    %c0_i32_1 = arith.constant 0 : i32
    return %c0_i32, %c0_i32_0 : i32, i32
  }
  func.func @transform_3(%arg0: i32) -> (i32, i32) {
    %c0_i32 = arith.constant 0 : i32
    %c0_i32_0 = arith.constant 0 : i32
    return %arg0, %c0_i32 : i32, i32
  }
  func.func @transform_4(%arg0: i32) -> (i32, i32, i32) {
    %c0_i32 = arith.constant 0 : i32
    %c0_i32_0 = arith.constant 0 : i32
    %c0_i32_1 = arith.constant 0 : i32
    return %arg0, %c0_i32, %c0_i32_0 : i32, i32, i32
  }
}

module attributes {stable_mosaic.version = 11 : i64} {
  func.func @bn_apply_kernel(%arg0: i32, %arg1: memref<2x128xf32, #tpu.memory_space<vmem>>, %arg2: memref<1x128xf32, #tpu.memory_space<vmem>>, %arg3: memref<1x128xf32, #tpu.memory_space<vmem>>, %arg4: memref<128x128xf32, #tpu.memory_space<vmem>>, %arg5: memref<128x128xf32, #tpu.memory_space<vmem>>) attributes {dimension_semantics = [#tpu.dimension_semantics<parallel>], iteration_bounds = array<i64: 1>, scalar_prefetch = 0 : i64, scratch_operands = 0 : i64, tpu.core_type = #tpu.core_type<tc>, window_params = [{pipeline_mode = #tpu.pipeline_mode<synchronous>, transform_indices = @transform_0, window_bounds = array<i64: 2, 128>}, {pipeline_mode = #tpu.pipeline_mode<synchronous>, transform_indices = @transform_1, window_bounds = array<i64: 1, 128>}, {pipeline_mode = #tpu.pipeline_mode<synchronous>, transform_indices = @transform_2, window_bounds = array<i64: 1, 128>}, {transform_indices = @transform_3, window_bounds = array<i64: 128, 128>}, {transform_indices = @transform_4, window_bounds = array<i64: 128, 128>}]} {
    %c0 = arith.constant 0 : index
    %c0_0 = arith.constant 0 : index
    %0 = vector.load %arg1[%c0, %c0_0] : memref<2x128xf32, #tpu.memory_space<vmem>>, vector<2x128xf32>
    %1 = vector.extract_strided_slice %0 {offsets = [0, 0], sizes = [1, 128], strides = [1, 1]} : vector<2x128xf32> to vector<1x128xf32>
    %cst = arith.constant 7.812500e-03 : f32
    %2 = vector.broadcast %cst : f32 to vector<1x128xf32>
    %3 = arith.mulf %1, %2 : vector<1x128xf32>
    %4 = vector.extract_strided_slice %0 {offsets = [1, 0], sizes = [1, 128], strides = [1, 1]} : vector<2x128xf32> to vector<1x128xf32>
    %cst_1 = arith.constant 7.812500e-03 : f32
    %5 = vector.broadcast %cst_1 : f32 to vector<1x128xf32>
    %6 = arith.mulf %4, %5 : vector<1x128xf32>
    %7 = arith.mulf %3, %3 : vector<1x128xf32>
    %8 = arith.subf %6, %7 : vector<1x128xf32>
    %c0_2 = arith.constant 0 : index
    %c0_3 = arith.constant 0 : index
    %9 = vector.load %arg2[%c0_2, %c0_3] : memref<1x128xf32, #tpu.memory_space<vmem>>, vector<1x128xf32>
    %cst_4 = arith.constant 9.99999974E-6 : f32
    %10 = vector.broadcast %cst_4 : f32 to vector<1x128xf32>
    %11 = arith.addf %8, %10 : vector<1x128xf32>
    %12 = math.rsqrt %11 : vector<1x128xf32>
    %13 = arith.mulf %9, %12 : vector<1x128xf32>
    %c0_5 = arith.constant 0 : index
    %c0_6 = arith.constant 0 : index
    %14 = vector.load %arg3[%c0_5, %c0_6] : memref<1x128xf32, #tpu.memory_space<vmem>>, vector<1x128xf32>
    %15 = arith.mulf %3, %13 : vector<1x128xf32>
    %16 = arith.subf %14, %15 : vector<1x128xf32>
    %c0_7 = arith.constant 0 : index
    %c0_8 = arith.constant 0 : index
    %17 = vector.load %arg4[%c0_7, %c0_8] : memref<128x128xf32, #tpu.memory_space<vmem>>, vector<128x128xf32>
    %18 = vector.broadcast %13 : vector<1x128xf32> to vector<128x128xf32>
    %19 = arith.mulf %17, %18 : vector<128x128xf32>
    %20 = vector.broadcast %16 : vector<1x128xf32> to vector<128x128xf32>
    %21 = arith.addf %19, %20 : vector<128x128xf32>
    %c0_9 = arith.constant 0 : index
    %c0_10 = arith.constant 0 : index
    %22 = vector.load %arg5[%c0_9, %c0_10] : memref<128x128xf32, #tpu.memory_space<vmem>>, vector<128x128xf32>
    tpu.vector_store %arg5[%c0_9, %c0_10], %21 {strides = array<i32>} : memref<128x128xf32, #tpu.memory_space<vmem>>, vector<128x128xf32>,
    return
  }
  func.func @transform_0(%arg0: i32) -> (i32, i32) {
    %c0_i32 = arith.constant 0 : i32
    %c0_i32_0 = arith.constant 0 : i32
    %c0_i32_1 = arith.constant 0 : i32
    return %c0_i32, %c0_i32_0 : i32, i32
  }
  func.func @transform_1(%arg0: i32) -> (i32, i32) {
    %c0_i32 = arith.constant 0 : i32
    %c0_i32_0 = arith.constant 0 : i32
    %c0_i32_1 = arith.constant 0 : i32
    return %c0_i32, %c0_i32_0 : i32, i32
  }
  func.func @transform_2(%arg0: i32) -> (i32, i32) {
    %c0_i32 = arith.constant 0 : i32
    %c0_i32_0 = arith.constant 0 : i32
    %c0_i32_1 = arith.constant 0 : i32
    return %c0_i32, %c0_i32_0 : i32, i32
  }
  func.func @transform_3(%arg0: i32) -> (i32, i32) {
    %c0_i32 = arith.constant 0 : i32
    %c0_i32_0 = arith.constant 0 : i32
    return %arg0, %c0_i32 : i32, i32
  }
  func.func @transform_4(%arg0: i32) -> (i32, i32) {
    %c0_i32 = arith.constant 0 : i32
    %c0_i32_0 = arith.constant 0 : i32
    return %arg0, %c0_i32 : i32, i32
  }
}

</mosaic_0001>

<bundles_post_ra>
// kernel: gin_encoder_forward.3
= control target key start
LH: loop header
LB: loop body
LE: loop exit
PB: predicated region body
PF: predicated region fallthrough
CT: control target
= control target key end

     0   :  { %v131_v6 = vmov 1966171168   ;;  %v31_v8 = vlaneseq  ;;  %s262_s0 = inlined_call_operand.vmem [shape: f32[2,128], index: 0, kind: input, shape index: {}]   ;;  %s263_s1 = inlined_call_operand.vmem [shape: f32[1,128], index: 1, kind: input, shape index: {}]   ;;  %s264_s2 = inlined_call_operand.vmem [shape: f32[1,128], index: 2, kind: input, shape index: {}]   ;;  %s265_s3 = inlined_call_operand.vmem [shape: f32[128,128], index: 3, kind: input, shape index: {}]   ;;  %s266_s4 = inlined_call_operand.vmem [shape: f32[128,128], index: 4, kind: output, shape index: {}]  }
   0x1   :  { %v17_v0 = vld [vmem:[%s262_s0] sm:$0x3]  ;;  %v29_v7 = vunpack.c.l.s4 %v131_v6  ;;  %v49_v21 = vld [vmem:[%s265_s3 + $0x8] sm:$0xff]  ;;  %v50_v22 = vld [vmem:[%s265_s3 + $0x10] sm:$0xff] }
   0x2   :  { %v18_v1 = vmul.f32 0.0078125, %v17_v0  ;;  %v32_v10 = vshrl.u32 %v31_v8, 7  ;;  %v24_v15 = vld [vmem:[%s263_s1] sm:$0x1]  ;;  %v51_v23 = vld [vmem:[%s265_s3 + $0x18] sm:$0xff]  ;;  %v53_v27 = vld [vmem:[%s265_s3 + $0x28] sm:$0xff] }
   0x3   :  { %v30_v9 = vunpack.c.0.s8 %v29_v7  ;;  %v45_v19 = vld [vmem:[%s264_s2] sm:$0x1]  ;;  %v54_v28 = vld [vmem:[%s265_s3 + $0x30] sm:$0xff]  ;;  %v55_v29 = vld [vmem:[%s265_s3 + $0x38] sm:$0xff] }
   0x4   :  { %v19_v2 = vmul.f32 %v18_v1, %v18_v1  ;;  %v67_v17 = vsub.s32 0, %v32_v10  ;;  %v48_v20 = vld [vmem:[%s265_s3] sm:$0xff]  ;;  %v57_v31 = vld [vmem:[%s265_s3 + $0x48] sm:$0xff]  ;;  %v58_v32 = vld [vmem:[%s265_s3 + $0x50] sm:$0xff] }
   0x5   :  { %v33_v11 = vsub.s32 %v30_v9, %v32_v10  ;;  %v52_v24 = vld [vmem:[%s265_s3 + $0x20] sm:$0xff]  ;;  %v59_v37 = vld [vmem:[%s265_s3 + $0x58] sm:$0xff]  ;;  %v61_v39 = vld [vmem:[%s265_s3 + $0x68] sm:$0xff] }
   0x6   :  { %v21_v3 = vrot.slane %v19_v2, 7  ;;  %v56_v30 = vld [vmem:[%s265_s3 + $0x40] sm:$0xff]  ;;  %v62_v56 = vld [vmem:[%s265_s3 + $0x70] sm:$0xff]  ;;  %v63_v57 = vld [vmem:[%s265_s3 + $0x78] sm:$0xff] }
   0x7   :  { %v60_v38 = vld [vmem:[%s265_s3 + $0x60] sm:$0xff] }
   0x8   :  { %v23_v4 = vsub.f32 %v18_v1, %v21_v3 }
   0xa   :  { %v25_v5 = vadd.f32 1e-05, %v23_v4 }
   0xc   :  { %129 = vrsqrt.f32 %v25_v5 }
  0x19   :  { %v130_v12 = vpop.eup %129 }
  0x1a   :  { %v34_v13 = vrot.slane %v130_v12, %v33_v11 }
  0x1c   :  { %v35_v14 = vcombine.high %v34_v13, %v34_v13 }
  0x1e   :  { %v42_v16 = vrot.slane %v35_v14, %v33_v11 }
  0x20   :  { %v44_v18 = vmul.f32 %v42_v16, %v24_v15 }
  0x22   :  { %v46_v25 = vmul.f32 %v44_v18, %v18_v1  ;;  %v68_v26 = vrot.slane %v44_v18, %v67_v17 }
  0x24   :  { %v47_v33 = vsub.f32 %v45_v19, %v46_v25  ;;  %v70_v34 = vmul.f32 %v68_v26, %v48_v20  ;;  %v71_v35 = vmul.f32 %v68_v26, %v49_v21  ;;  %v72_v36 = vmul.f32 %v68_v26, %v50_v22 }
  0x25   :  { %v73_v40 = vmul.f32 %v68_v26, %v51_v23  ;;  %v74_v41 = vmul.f32 %v68_v26, %v52_v24  ;;  %v75_v42 = vmul.f32 %v68_v26, %v53_v27  ;;  %v76_v43 = vmul.f32 %v68_v26, %v54_v28 }
  0x26   :  { %v90_v44 = vrot.slane %v47_v33, %v67_v17  ;;  %v77_v45 = vmul.f32 %v68_v26, %v55_v29  ;;  %v78_v46 = vmul.f32 %v68_v26, %v56_v30  ;;  %v79_v47 = vmul.f32 %v68_v26, %v57_v31 }
  0x27   :  { %v80_v48 = vmul.f32 %v68_v26, %v58_v32  ;;  %v81_v49 = vmul.f32 %v68_v26, %v59_v37  ;;  %v82_v50 = vmul.f32 %v68_v26, %v60_v38  ;;  %v83_v51 = vmul.f32 %v68_v26, %v61_v39 }
  0x28   :  { %v92_v52 = vadd.f32 %v90_v44, %v70_v34  ;;  %v93_v53 = vadd.f32 %v90_v44, %v71_v35  ;;  %v94_v54 = vadd.f32 %v90_v44, %v72_v36  ;;  %v95_v55 = vadd.f32 %v90_v44, %v73_v40 }
  0x29   :  { %v96_v58 = vadd.f32 %v90_v44, %v74_v41  ;;  %v97_v59 = vadd.f32 %v90_v44, %v75_v42  ;;  %v98_v60 = vadd.f32 %v90_v44, %v76_v43  ;;  %v99_v61 = vadd.f32 %v90_v44, %v77_v45 }
  0x2a   :  { %108 = vst [vmem:[%s266_s4] sm:$0xff] %v92_v52  ;;  %109 = vst [vmem:[%s266_s4 + $0x8] sm:$0xff] %v93_v53  ;;  %v100_v62 = vadd.f32 %v90_v44, %v78_v46  ;;  %v101_v63 = vadd.f32 %v90_v44, %v79_v47  ;;  %v102_v0 = vadd.f32 %v90_v44, %v80_v48 }
  0x2b   :  { %110 = vst [vmem:[%s266_s4 + $0x10] sm:$0xff] %v94_v54  ;;  %111 = vst [vmem:[%s266_s4 + $0x18] sm:$0xff] %v95_v55  ;;  %v103_v1 = vadd.f32 %v90_v44, %v81_v49  ;;  %v104_v2 = vadd.f32 %v90_v44, %v82_v50  ;;  %v105_v3 = vadd.f32 %v90_v44, %v83_v51 }
  0x2c   :  { %112 = vst [vmem:[%s266_s4 + $0x20] sm:$0xff] %v96_v58  ;;  %113 = vst [vmem:[%s266_s4 + $0x28] sm:$0xff] %v97_v59  ;;  %v84_v4 = vmul.f32 %v68_v26, %v62_v56  ;;  %v85_v5 = vmul.f32 %v68_v26, %v63_v57 }
  0x2d   :  { %114 = vst [vmem:[%s266_s4 + $0x30] sm:$0xff] %v98_v60  ;;  %115 = vst [vmem:[%s266_s4 + $0x38] sm:$0xff] %v99_v61 }
  0x2e   :  { %116 = vst [vmem:[%s266_s4 + $0x40] sm:$0xff] %v100_v62  ;;  %117 = vst [vmem:[%s266_s4 + $0x48] sm:$0xff] %v101_v63  ;;  %v106_v6 = vadd.f32 %v90_v44, %v84_v4  ;;  %v107_v7 = vadd.f32 %v90_v44, %v85_v5 }
  0x2f   :  { %118 = vst [vmem:[%s266_s4 + $0x50] sm:$0xff] %v102_v0  ;;  %119 = vst [vmem:[%s266_s4 + $0x58] sm:$0xff] %v103_v1 }
  0x30   :  { %120 = vst [vmem:[%s266_s4 + $0x60] sm:$0xff] %v104_v2  ;;  %121 = vst [vmem:[%s266_s4 + $0x68] sm:$0xff] %v105_v3 }
  0x31   :  { %122 = vst [vmem:[%s266_s4 + $0x70] sm:$0xff] %v106_v6  ;;  %123 = vst [vmem:[%s266_s4 + $0x78] sm:$0xff] %v107_v7 }

// kernel: gin_encoder_forward.2
= control target key start
LH: loop header
LB: loop body
LE: loop exit
PB: predicated region body
PF: predicated region fallthrough
CT: control target
= control target key end

     0   :  { %vm311_vm0 = vcmask 130048   ;;  %vm507_vm1 = vcmask 1040384   ;;  %s835_s1 = inlined_call_operand.vmem [shape: bf16[128,16], index: 1, kind: input, shape index: {}]   ;;  %s836_s0 = inlined_call_operand.vmem [shape: bf16[128,128], index: 0, kind: input, shape index: {}]   ;;  %s837_s2 = inlined_call_operand.vmem [shape: bf16[16,128], index: 2, kind: input, shape index: {}]   ;;  %s838_s3 = inlined_call_operand.vmem [shape: f32[128,128], index: 3, kind: output, shape index: {0}]   ;;  %s839_s4 = inlined_call_operand.vmem [shape: f32[1,2,128], index: 4, kind: output, shape index: {1}]  }
   0x1   :  { %v659_v0 = vld [vmem:[%s835_s1 + $0x38] sm:$0xff]   ;;  %v660_v1 = vld [vmem:[%s835_s1 + $0x30] sm:$0xff]   ;;  %v661_v2 = vld [vmem:[%s835_s1 + $0x28] sm:$0xff]  }
   0x2   :  { %609 = vmatprep.subr.bf16.mxu0 %v659_v0  ;;  %v662_v3 = vld [vmem:[%s835_s1 + $0x20] sm:$0xff]   ;;  %v663_v5 = vld [vmem:[%s835_s1 + $0x18] sm:$0xff]   ;;  %v664_v6 = vld [vmem:[%s835_s1 + $0x10] sm:$0xff]  }
   0x3   :  { %610 = vmatpush3.bf16.msra.mxu0 %v659_v0  ;;  %v667_v4 = vld [vmem:[%s836_s0] sm:$0xff]   ;;  %v665_v7 = vld [vmem:[%s835_s1 + $0x8] sm:$0xff]   ;;  %v669_v10 = vld [vmem:[%s836_s0 + $0x10] sm:$0xff]  }
   0x4   :  { %611 = vmatprep.subr.bf16.mxu0 %v660_v1  ;;  %625 = vmatprep.mubr.bf16.mxu0 %v667_v4  ;;  %v666_v8 = vld [vmem:[%s835_s1] sm:$0xff]   ;;  %v668_v9 = vld [vmem:[%s836_s0 + $0x8] sm:$0xff]   ;;  %v670_v11 = vld [vmem:[%s836_s0 + $0x18] sm:$0xff]  }
   0x5   :  { %v671_v12 = vld [vmem:[%s836_s0 + $0x20] sm:$0xff]   ;;  %v672_v13 = vld [vmem:[%s836_s0 + $0x28] sm:$0xff]   ;;  %v673_v14 = vld [vmem:[%s836_s0 + $0x30] sm:$0xff]  }
   0x6   :  { %v674_v15 = vld [vmem:[%s836_s0 + $0x38] sm:$0xff]   ;;  %v675_v16 = vld [vmem:[%s837_s2] sm:$0xff]   ;;  %v577_v19 = vld [vmem:[%s835_s1 + $0x8] sm:$0xff]  }
   0x7   :  { %612 = vmatpush3.bf16.msra.mxu0 %v660_v1  ;;  %641 = vmatprep.subr.bf16.mxu1 %v675_v16  ;;  %v546_v18 = vld [vmem:[%s835_s1] sm:$0xff]   ;;  %v552_v21 = vunpack.c.h.bf16 %v577_v19  ;;  %v551_v24 = vunpack.c.l.bf16 %v577_v19  ;;  %v578_v32 = vld [vmem:[%s835_s1 + $0x10] sm:$0xff]   ;;  %v579_v33 = vld [vmem:[%s835_s1 + $0x18] sm:$0xff]  }
   0x8   :  { %613 = vmatprep.subr.bf16.mxu0 %v661_v2  ;;  %642 = vmatpush3.bf16.msra.mxu1 %v675_v16  ;;  %v547_v22 = vunpack.c.l.bf16 %v546_v18  ;;  %v548_v23 = vunpack.c.h.bf16 %v546_v18  ;;  %v560_v37 = vunpack.c.h.bf16 %v579_v33  ;;  %v555_v38 = vunpack.c.l.bf16 %v578_v32  ;;  %v580_v48 = vld [vmem:[%s835_s1 + $0x20] sm:$0xff]   ;;  %v581_v50 = vld [vmem:[%s835_s1 + $0x28] sm:$0xff]   ;;  %v582_v0 = vld [vmem:[%s835_s1 + $0x30] sm:$0xff]  }
   0x9   :  { %v556_v39 = vunpack.c.h.bf16 %v578_v32  ;;  %v559_v40 = vunpack.c.l.bf16 %v579_v33  ;;  %v568_v53 = vunpack.c.h.bf16 %v581_v50  ;;  %v563_v54 = vunpack.c.l.bf16 %v580_v48 }
   0xa   :  { %v564_v55 = vunpack.c.h.bf16 %v580_v48  ;;  %v567_v56 = vunpack.c.l.bf16 %v581_v50 }
   0xb   :  { %614 = vmatpush3.bf16.msra.mxu0 %v661_v2  ;;  %v583_v2 = vld [vmem:[%s835_s1 + $0x38] sm:$0xff]  }
   0xc   :  { %615 = vmatprep.subr.bf16.mxu0 %v662_v3 }
   0xf   :  { %616 = vmatpush3.bf16.msra.mxu0 %v662_v3 }
  0x10   :  { %617 = vmatprep.subr.bf16.mxu0 %v663_v5 }
  0x13   :  { %618 = vmatpush3.bf16.msra.mxu0 %v663_v5  ;;  %v576_v5 = vunpack.c.h.bf16 %v583_v2 }
  0x14   :  { %619 = vmatprep.subr.bf16.mxu0 %v664_v6 }
  0x17   :  { %620 = vmatpush3.bf16.msra.mxu0 %v664_v6  ;;  %v571_v6 = vunpack.c.l.bf16 %v582_v0 }
  0x18   :  { %621 = vmatprep.subr.bf16.mxu0 %v665_v7 }
  0x1b   :  { %622 = vmatpush3.bf16.msra.mxu0 %v665_v7  ;;  %v572_v7 = vunpack.c.h.bf16 %v582_v0 }
  0x1c   :  { %623 = vmatprep.subr.bf16.mxu0 %v666_v8 }
  0x1f   :  { %624 = vmatpush3.bf16.msra.mxu0 %v666_v8  ;;  %v575_v8 = vunpack.c.l.bf16 %v583_v2 }
  0x22   :  { %626 = vmatmul.mubr.bf16.vlgmr.msra.gmra.mxu0 %v668_v9 }
  0x23   :  { %629 = vmatprep.mubr.bf16.mxu0 %v669_v10 }
  0x2a   :  { %630 = vmatmul.mubr.bf16.gmra.mxu0 %v670_v11 }
  0x2b   :  { %633 = vmatprep.mubr.bf16.mxu0 %v671_v12 }
  0x32   :  { %634 = vmatmul.mubr.bf16.gmra.mxu0 %v672_v13 }
  0x33   :  { %637 = vmatprep.mubr.bf16.mxu0 %v673_v14 }
  0x3a   :  { %638 = vmatmul.mubr.bf16.gmra.mxu0 %v674_v15 }
  0xe2   :  { %v627_v17 = vpop.f32.mrf.mxu0 }
  0xe3   :  { %v281_v30 = vadd.f32 %v627_v17, %v551_v24 }
  0xe4   :  { %v180_v20 = vpop.f32.mrf.mxu0 }
  0xe5   :  { %v279_v28 = vadd.f32 %v547_v22, %v180_v20 }
  0xe6   :  { %v628_v25 = vpop.f32.mrf.mxu0 }
  0xe7   :  { %v282_v26 = vadd.f32 %v628_v25, %v552_v21 }
  0xe8   :  { %v183_v27 = vpop.f32.mrf.mxu0 }
  0xe9   :  { %v280_v29 = vadd.f32 %v548_v23, %v183_v27  ;;  %v296_v35 = vpack.c.bf16 %v282_v26, %v281_v30 }
  0xea   :  { %v631_v31 = vpop.f32.mrf.mxu0 }
  0xeb   :  { %v295_v34 = vpack.c.bf16 %v280_v29, %v279_v28  ;;  %v285_v46 = vadd.f32 %v631_v31, %v559_v40 }
  0xec   :  { %v196_v36 = vpop.f32.mrf.mxu0 }
  0xed   :  { %643 = vmatprep.mubr.msk.bf16.mxu1 %vm311_vm0, %v295_v34  ;;  %v283_v44 = vadd.f32 %v555_v38, %v196_v36 }
  0xee   :  { %v632_v41 = vpop.f32.mrf.mxu0  ;;  %644 = vmatmul.mubr.msk.bf16.vlgmr.msra.gmra.mxu1 %vm311_vm0, %v296_v35 }
  0xef   :  { %v286_v42 = vadd.f32 %v632_v41, %v560_v37 }
  0xf0   :  { %v199_v43 = vpop.f32.mrf.mxu0 }
  0xf1   :  { %v284_v45 = vadd.f32 %v556_v39, %v199_v43  ;;  %v298_v51 = vpack.c.bf16 %v286_v42, %v285_v46 }
  0xf2   :  { %v635_v47 = vpop.f32.mrf.mxu0 }
  0xf3   :  { %v297_v49 = vpack.c.bf16 %v284_v45, %v283_v44  ;;  %v289_v62 = vadd.f32 %v635_v47, %v567_v56 }
  0xf4   :  { %v212_v52 = vpop.f32.mrf.mxu0 }
  0xf5   :  { %647 = vmatprep.mubr.msk.bf16.mxu1 %vm311_vm0, %v297_v49  ;;  %v287_v60 = vadd.f32 %v563_v54, %v212_v52 }
  0xf6   :  { %v636_v57 = vpop.f32.mrf.mxu0  ;;  %648 = vmatmul.mubr.msk.bf16.gmra.mxu1 %vm311_vm0, %v298_v51 }
  0xf7   :  { %v290_v58 = vadd.f32 %v636_v57, %v568_v53 }
  0xf8   :  { %v215_v59 = vpop.f32.mrf.mxu0 }
  0xf9   :  { %v288_v61 = vadd.f32 %v564_v55, %v215_v59  ;;  %v300_v3 = vpack.c.bf16 %v290_v58, %v289_v62 }
  0xfa   :  { %v639_v63 = vpop.f32.mrf.mxu0 }
  0xfb   :  { %v299_v1 = vpack.c.bf16 %v288_v61, %v287_v60  ;;  %v293_v14 = vadd.f32 %v639_v63, %v575_v8 }
  0xfc   :  { %v228_v4 = vpop.f32.mrf.mxu0 }
  0xfd   :  { %651 = vmatprep.mubr.msk.bf16.mxu1 %vm311_vm0, %v299_v1  ;;  %v291_v12 = vadd.f32 %v571_v6, %v228_v4 }
  0xfe   :  { %v640_v9 = vpop.f32.mrf.mxu0  ;;  %652 = vmatmul.mubr.msk.bf16.gmra.mxu1 %vm311_vm0, %v300_v3 }
  0xff   :  { %v294_v10 = vadd.f32 %v640_v9, %v576_v5 }
 0x100   :  { %v231_v11 = vpop.f32.mrf.mxu0 }
 0x101   :  { %v292_v13 = vadd.f32 %v572_v7, %v231_v11  ;;  %v302_v16 = vpack.c.bf16 %v294_v10, %v293_v14 }
 0x103   :  { %v301_v15 = vpack.c.bf16 %v292_v13, %v291_v12 }
 0x105   :  { %655 = vmatprep.mubr.msk.bf16.mxu1 %vm311_vm0, %v301_v15 }
 0x106   :  { %656 = vmatmul.mubr.msk.bf16.gmra.mxu1 %vm311_vm0, %v302_v16 }
 0x1ae   :  { %v645_v17 = vpop.f32.mrf.mxu1 }
 0x1af   :  { %435 = vst [vmem:[%s838_s3 + $0x10] sm:$0xff] %v645_v17  ;;  %v472_v25 = vmul.f32 %v645_v17, %v645_v17 }
 0x1b0   :  { %v370_v18 = vpop.f32.mrf.mxu1 }
 0x1b1   :  { %433 = vst [vmem:[%s838_s3] sm:$0xff] %v370_v18  ;;  %v470_v21 = vmul.f32 %v370_v18, %v370_v18 }
 0x1b2   :  { %v646_v19 = vpop.f32.mrf.mxu1 }
 0x1b3   :  { %436 = vst [vmem:[%s838_s3 + $0x18] sm:$0xff] %v646_v19  ;;  %v473_v29 = vmul.f32 %v646_v19, %v646_v19 }
 0x1b4   :  { %v373_v20 = vpop.f32.mrf.mxu1 }
 0x1b5   :  { %434 = vst [vmem:[%s838_s3 + $0x8] sm:$0xff] %v373_v20  ;;  %v449_v22 = vadd.f32 %v373_v20, %v370_v18  ;;  %v471_v23 = vmul.f32 %v373_v20, %v373_v20 }
 0x1b6   :  { %v649_v24 = vpop.f32.mrf.mxu1 }
 0x1b7   :  { %v450_v26 = vadd.f32 %v645_v17, %v449_v22  ;;  %v486_v27 = vadd.f32 %v471_v23, %v470_v21  ;;  %439 = vst [vmem:[%s838_s3 + $0x30] sm:$0xff] %v649_v24  ;;  %v476_v41 = vmul.f32 %v649_v24, %v649_v24 }
 0x1b8   :  { %v386_v28 = vpop.f32.mrf.mxu1 }
 0x1b9   :  { %v487_v30 = vadd.f32 %v486_v27, %v472_v25  ;;  %437 = vst [vmem:[%s838_s3 + $0x20] sm:$0xff] %v386_v28  ;;  %v451_v31 = vadd.f32 %v646_v19, %v450_v26  ;;  %v474_v34 = vmul.f32 %v386_v28, %v386_v28 }
 0x1ba   :  { %v650_v32 = vpop.f32.mrf.mxu1 }
 0x1bb   :  { %v452_v33 = vadd.f32 %v451_v31, %v386_v28  ;;  %v488_v35 = vadd.f32 %v487_v30, %v473_v29  ;;  %440 = vst [vmem:[%s838_s3 + $0x38] sm:$0xff] %v650_v32  ;;  %v477_v45 = vmul.f32 %v650_v32, %v650_v32 }
 0x1bc   :  { %v389_v36 = vpop.f32.mrf.mxu1 }
 0x1bd   :  { %v489_v37 = vadd.f32 %v488_v35, %v474_v34  ;;  %438 = vst [vmem:[%s838_s3 + $0x28] sm:$0xff] %v389_v36  ;;  %v453_v38 = vadd.f32 %v452_v33, %v389_v36  ;;  %v475_v39 = vmul.f32 %v389_v36, %v389_v36 }
 0x1be   :  { %v653_v40 = vpop.f32.mrf.mxu1 }
 0x1bf   :  { %v454_v42 = vadd.f32 %v649_v24, %v453_v38  ;;  %v490_v43 = vadd.f32 %v489_v37, %v475_v39  ;;  %443 = vst [vmem:[%s838_s3 + $0x50] sm:$0xff] %v653_v40  ;;  %v480_v57 = vmul.f32 %v653_v40, %v653_v40 }
 0x1c0   :  { %v402_v44 = vpop.f32.mrf.mxu1 }
 0x1c1   :  { %v491_v46 = vadd.f32 %v490_v43, %v476_v41  ;;  %441 = vst [vmem:[%s838_s3 + $0x40] sm:$0xff] %v402_v44  ;;  %v455_v47 = vadd.f32 %v650_v32, %v454_v42  ;;  %v478_v50 = vmul.f32 %v402_v44, %v402_v44 }
 0x1c2   :  { %v654_v48 = vpop.f32.mrf.mxu1 }
 0x1c3   :  { %v456_v49 = vadd.f32 %v455_v47, %v402_v44  ;;  %v492_v51 = vadd.f32 %v491_v46, %v477_v45  ;;  %444 = vst [vmem:[%s838_s3 + $0x58] sm:$0xff] %v654_v48  ;;  %v481_v61 = vmul.f32 %v654_v48, %v654_v48 }
 0x1c4   :  { %v405_v52 = vpop.f32.mrf.mxu1 }
 0x1c5   :  { %v493_v53 = vadd.f32 %v492_v51, %v478_v50  ;;  %442 = vst [vmem:[%s838_s3 + $0x48] sm:$0xff] %v405_v52  ;;  %v457_v54 = vadd.f32 %v456_v49, %v405_v52  ;;  %v479_v55 = vmul.f32 %v405_v52, %v405_v52 }
 0x1c6   :  { %v657_v56 = vpop.f32.mrf.mxu1 }
 0x1c7   :  { %v458_v58 = vadd.f32 %v653_v40, %v457_v54  ;;  %v494_v59 = vadd.f32 %v493_v53, %v479_v55  ;;  %447 = vst [vmem:[%s838_s3 + $0x70] sm:$0xff] %v657_v56  ;;  %v484_v8 = vmul.f32 %v657_v56, %v657_v56 }
 0x1c8   :  { %v418_v60 = vpop.f32.mrf.mxu1 }
 0x1c9   :  { %v495_v62 = vadd.f32 %v494_v59, %v480_v57  ;;  %445 = vst [vmem:[%s838_s3 + $0x60] sm:$0xff] %v418_v60  ;;  %v459_v63 = vadd.f32 %v654_v48, %v458_v58  ;;  %v482_v2 = vmul.f32 %v418_v60, %v418_v60 }
 0x1ca   :  { %v658_v0 = vpop.f32.mrf.mxu1 }
 0x1cb   :  { %v460_v1 = vadd.f32 %v459_v63, %v418_v60  ;;  %v496_v3 = vadd.f32 %v495_v62, %v481_v61  ;;  %448 = vst [vmem:[%s838_s3 + $0x78] sm:$0xff] %v658_v0  ;;  %v485_v11 = vmul.f32 %v658_v0, %v658_v0 }
 0x1cc   :  { %v421_v4 = vpop.f32.mrf.mxu1 }
 0x1cd   :  { %v497_v5 = vadd.f32 %v496_v3, %v482_v2  ;;  %446 = vst [vmem:[%s838_s3 + $0x68] sm:$0xff] %v421_v4  ;;  %v461_v6 = vadd.f32 %v460_v1, %v421_v4  ;;  %v483_v7 = vmul.f32 %v421_v4, %v421_v4 }
 0x1cf   :  { %v462_v9 = vadd.f32 %v657_v56, %v461_v6  ;;  %v498_v10 = vadd.f32 %v497_v5, %v483_v7 }
 0x1d1   :  { %v463_v12 = vadd.f32 %v658_v0, %v462_v9  ;;  %v499_v13 = vadd.f32 %v498_v10, %v484_v8 }
 0x1d3   :  { %v464_v14 = vrot.slane %v463_v12, 4  ;;  %v500_v15 = vadd.f32 %v499_v13, %v485_v11 }
 0x1d5   :  { %v465_v16 = vadd.f32 %v464_v14, %v463_v12  ;;  %v501_v17 = vrot.slane %v500_v15, 4 }
 0x1d7   :  { %v466_v18 = vrot.slane %v465_v16, 2  ;;  %v502_v19 = vadd.f32 %v501_v17, %v500_v15 }
 0x1d9   :  { %v467_v20 = vadd.f32 %v466_v18, %v465_v16  ;;  %v503_v21 = vrot.slane %v502_v19, 2 }
 0x1db   :  { %v468_v22 = vrot.slane %v467_v20, 1  ;;  %v504_v23 = vadd.f32 %v503_v21, %v502_v19 }
 0x1dd   :  { %v505_v24 = vrot.slane %v504_v23, 1  ;;  %v469_v25 = vadd.f32 %v468_v22, %v467_v20 }
 0x1df   :  { %v506_v26 = vadd.f32 %v505_v24, %v504_v23 }
 0x1e1   :  { %v508_v27 = vsel %vm507_vm1, %v469_v25, %v506_v26 }
 0x1e2   :  { %509 = vst [vmem:[%s839_s4] sm:$0x3] %v508_v27 }

</bundles_post_ra>
